<compile_context>
chip_gen: v5e
topology: v5e:2x2
jax: 0.10.0
libtpu: 0.0.40
codegen_flags: <defaults>
</compile_context>

<pallas_src>
import jax
import jax.numpy as jnp
from jax.experimental import pallas as pl
from jax.experimental.pallas import tpu as pltpu


LANE = 128      # lane width / MXU alignment for feature dims
SUBLANE = 8     # sublane granularity for the batch tile


def _round_up(n, m):
    return ((n + m - 1) // m) * m


def _make_mlp_kernel(num_layers):
    """Fused [Linear+ReLU] * (num_layers-1) + Linear on one batch tile."""

    def kernel(*refs):
        x_ref = refs[0]
        o_ref = refs[-1]
        p = refs[1:-1]
        assert len(p) == 2 * num_layers

        h = x_ref[...].astype(jnp.float32)        # (TB, in_pad) f32
        for i in range(num_layers):
            w = p[2 * i][...]                      # (in_pad, out_pad) bf16, resident
            b = p[2 * i + 1][...]                  # (1, out_pad) f32, resident
            # bf16 MXU inputs, f32 accumulation; bias-add / ReLU in f32.
            h = jnp.dot(h.astype(jnp.bfloat16), w,
                        preferred_element_type=jnp.float32) + b
            if i < num_layers - 1:                 # ReLU on all but the output layer
                h = jnp.maximum(h, 0.0)
        o_ref[...] = h.astype(o_ref.dtype)

    return kernel


def mlp_simple_pallas(x, params, *, batch_tile=256):
    """Run the fused MLP kernel.

    x:      (batch, input_dim) float32
    params: list of (W, b) with W of shape (in, out), b of shape (out,)
    """
    batch, input_dim = x.shape
    num_layers = len(params)
    out_dim = params[-1][0].shape[1]

    in_dims = [w.shape[0] for w, _ in params]
    out_dims = [w.shape[1] for w, _ in params]
    in_pads = [_round_up(d, LANE) for d in in_dims]
    out_pads = [_round_up(d, LANE) for d in out_dims]

    # Batch tile: sublane-aligned, no bigger than the (padded) batch itself.
    tb = min(_round_up(batch_tile, SUBLANE), _round_up(batch, SUBLANE))
    batch_pad = _round_up(batch, tb)
    grid = (batch_pad // tb,)

    # Zero-pad x to (batch_pad, in_pad0); zero rows/cols contribute nothing.
    x_p = jnp.zeros((batch_pad, in_pads[0]), jnp.float32)
    x_p = x_p.at[:batch, :input_dim].set(x.astype(jnp.float32))

    flat_inputs = [x_p]
    in_specs = [pl.BlockSpec((tb, in_pads[0]), lambda i: (i, 0))]
    for li, (w, b) in enumerate(params):
        wp = jnp.zeros((in_pads[li], out_pads[li]), jnp.bfloat16)
        wp = wp.at[:in_dims[li], :out_dims[li]].set(w.astype(jnp.bfloat16))
        bp = jnp.zeros((1, out_pads[li]), jnp.float32)
        bp = bp.at[0, :out_dims[li]].set(b.astype(jnp.float32))
        flat_inputs += [wp, bp]
        # Constant index_map -> weights/biases fetched once, stay resident.
        in_specs += [
            pl.BlockSpec((in_pads[li], out_pads[li]), lambda i: (0, 0)),
            pl.BlockSpec((1, out_pads[li]), lambda i: (0, 0)),
        ]

    out_specs = pl.BlockSpec((tb, out_pads[-1]), lambda i: (i, 0))
    out_shape = jax.ShapeDtypeStruct((batch_pad, out_pads[-1]), x.dtype)

    # VMEM budget: resident bf16 weights + f32 biases + double-buffered x/out
    # tiles + in-flight f32 activations; 1.5x headroom, clamped to 48 MiB
    # (safe on every generation incl. v7x's 64 MiB physical VMEM).
    weight_bytes = sum(ip * op * 2 for ip, op in zip(in_pads, out_pads))
    bias_bytes = sum(op * 4 for op in out_pads)
    io_bytes = 2 * tb * (in_pads[0] + out_pads[-1]) * 4
    act_bytes = 4 * tb * max(in_pads + out_pads) * 4
    est = weight_bytes + bias_bytes + io_bytes + act_bytes
    vmem_limit = int(min(max(est * 3 // 2 + (4 << 20), 32 << 20), 48 << 20))

    flops = 2 * batch_pad * sum(ip * op for ip, op in zip(in_pads, out_pads))
    bytes_accessed = int(x_p.size * 4 + weight_bytes + bias_bytes
                         + batch_pad * out_pads[-1] * 4)

    kernel = _make_mlp_kernel(num_layers)
    out_padded = pl.pallas_call(
        kernel,
        out_shape=out_shape,
        grid=grid,
        in_specs=in_specs,
        out_specs=out_specs,
        compiler_params=pltpu.CompilerParams(
            dimension_semantics=("parallel",),
            vmem_limit_bytes=vmem_limit,
        ),
        cost_estimate=pl.CostEstimate(
            flops=flops, transcendentals=0, bytes_accessed=bytes_accessed),
    )(*flat_inputs)

    return out_padded[:batch, :out_dim]


def init_mlp_params(key, input_dim, output_dim, hidden_dim, depth):
    """Deterministic init mimicking PyTorch nn.Linear default (U[-1/sqrt(fan_in), +])."""
    dims = [(input_dim, hidden_dim)] + [(hidden_dim, hidden_dim)] * depth + [
        (hidden_dim, output_dim)
    ]
    params = []
    for (fan_in, fan_out) in dims:
        key, kw, kb = jax.random.split(key, 3)
        bound = 1.0 / jnp.sqrt(fan_in)
        w = jax.random.uniform(kw, (fan_in, fan_out), jnp.float32, -bound, bound)
        b = jax.random.uniform(kb, (fan_out,), jnp.float32, -bound, bound)
        params.append((w, b))
    return params


def mlp_simple_ref(x, params):
    """Pure-JAX (f32) reference of MLPSimple.forward (dropout p=0.0 is identity)."""
    h = x
    for i, (w, b) in enumerate(params):
        h = h @ w + b
        if i < len(params) - 1:
            h = jnp.maximum(h, 0.0)
    return h


if __name__ == "__main__":
    # Small shapes consistent with the module's forward.
    batch, input_dim, hidden_dim, output_dim, depth = 8, 16, 32, 8, 2

    key = jax.random.PRNGKey(0)
    kx, kp = jax.random.split(key)
    x = jax.random.normal(kx, (batch, input_dim), jnp.float32)
    params = init_mlp_params(kp, input_dim, output_dim, hidden_dim, depth)

    out = mlp_simple_pallas(x, params)
    out = jax.block_until_ready(out)

    ref = mlp_simple_ref(x, params)
    assert out.shape == (batch, output_dim)
    # bf16 MXU inputs (f32 accumulation) => loosened tolerance vs the f32 reference.
    assert jnp.allclose(out, ref, atol=5e-2, rtol=5e-2), "mismatch vs reference"

    print("KERNEL_OK")
</pallas_src>

<mosaic_0001>
module attributes {stable_mosaic.version = 11 : i64} {
  func.func @kernel(%arg0: i32, %arg1: memref<8x128xf32, #tpu.memory_space<vmem>>, %arg2: memref<128x128xbf16, #tpu.memory_space<vmem>>, %arg3: memref<1x128xf32, #tpu.memory_space<vmem>>, %arg4: memref<128x128xbf16, #tpu.memory_space<vmem>>, %arg5: memref<1x128xf32, #tpu.memory_space<vmem>>, %arg6: memref<128x128xbf16, #tpu.memory_space<vmem>>, %arg7: memref<1x128xf32, #tpu.memory_space<vmem>>, %arg8: memref<128x128xbf16, #tpu.memory_space<vmem>>, %arg9: memref<1x128xf32, #tpu.memory_space<vmem>>, %arg10: memref<8x128xf32, #tpu.memory_space<vmem>>) attributes {dimension_semantics = [#tpu.dimension_semantics<parallel>], iteration_bounds = array<i64: 1>, scalar_prefetch = 0 : i64, scratch_operands = 0 : i64, tpu.core_type = #tpu.core_type<tc>, window_params = [{transform_indices = @transform_0, window_bounds = array<i64: 8, 128>}, {pipeline_mode = #tpu.pipeline_mode<synchronous>, transform_indices = @transform_1, window_bounds = array<i64: 128, 128>}, {pipeline_mode = #tpu.pipeline_mode<synchronous>, transform_indices = @transform_2, window_bounds = array<i64: 1, 128>}, {pipeline_mode = #tpu.pipeline_mode<synchronous>, transform_indices = @transform_3, window_bounds = array<i64: 128, 128>}, {pipeline_mode = #tpu.pipeline_mode<synchronous>, transform_indices = @transform_4, window_bounds = array<i64: 1, 128>}, {pipeline_mode = #tpu.pipeline_mode<synchronous>, transform_indices = @transform_5, window_bounds = array<i64: 128, 128>}, {pipeline_mode = #tpu.pipeline_mode<synchronous>, transform_indices = @transform_6, window_bounds = array<i64: 1, 128>}, {pipeline_mode = #tpu.pipeline_mode<synchronous>, transform_indices = @transform_7, window_bounds = array<i64: 128, 128>}, {pipeline_mode = #tpu.pipeline_mode<synchronous>, transform_indices = @transform_8, window_bounds = array<i64: 1, 128>}, {transform_indices = @transform_9, window_bounds = array<i64: 8, 128>}]} {
    %c0 = arith.constant 0 : index
    %c0_0 = arith.constant 0 : index
    %0 = vector.load %arg1[%c0, %c0_0] : memref<8x128xf32, #tpu.memory_space<vmem>>, vector<8x128xf32>
    %c0_1 = arith.constant 0 : index
    %c0_2 = arith.constant 0 : index
    %1 = vector.load %arg2[%c0_1, %c0_2] : memref<128x128xbf16, #tpu.memory_space<vmem>>, vector<128x128xbf16>
    %c0_3 = arith.constant 0 : index
    %c0_4 = arith.constant 0 : index
    %2 = vector.load %arg3[%c0_3, %c0_4] : memref<1x128xf32, #tpu.memory_space<vmem>>, vector<1x128xf32>
    %3 = arith.truncf %0 : vector<8x128xf32> to vector<8x128xbf16>
    %cst = arith.constant dense<0.000000e+00> : vector<8x128xf32>
    %4 = tpu.matmul %3, %1, %cst {dimension_numbers = #tpu.dot_dimension_numbers<[1], [0], [0], [1], [0, 0, 1, 1], [], []>} : vector<8x128xbf16>, vector<128x128xbf16>, vector<8x128xf32> -> vector<8x128xf32>
    %5 = vector.broadcast %2 : vector<1x128xf32> to vector<8x128xf32>
    %6 = arith.addf %4, %5 : vector<8x128xf32>
    %cst_5 = arith.constant 0.000000e+00 : f32
    %7 = vector.broadcast %cst_5 : f32 to vector<8x128xf32>
    %8 = arith.maximumf %6, %7 : vector<8x128xf32>
    %c0_6 = arith.constant 0 : index
    %c0_7 = arith.constant 0 : index
    %9 = vector.load %arg4[%c0_6, %c0_7] : memref<128x128xbf16, #tpu.memory_space<vmem>>, vector<128x128xbf16>
    %c0_8 = arith.constant 0 : index
    %c0_9 = arith.constant 0 : index
    %10 = vector.load %arg5[%c0_8, %c0_9] : memref<1x128xf32, #tpu.memory_space<vmem>>, vector<1x128xf32>
    %11 = arith.truncf %8 : vector<8x128xf32> to vector<8x128xbf16>
    %cst_10 = arith.constant dense<0.000000e+00> : vector<8x128xf32>
    %12 = tpu.matmul %11, %9, %cst_10 {dimension_numbers = #tpu.dot_dimension_numbers<[1], [0], [0], [1], [0, 0, 1, 1], [], []>} : vector<8x128xbf16>, vector<128x128xbf16>, vector<8x128xf32> -> vector<8x128xf32>
    %13 = vector.broadcast %10 : vector<1x128xf32> to vector<8x128xf32>
    %14 = arith.addf %12, %13 : vector<8x128xf32>
    %cst_11 = arith.constant 0.000000e+00 : f32
    %15 = vector.broadcast %cst_11 : f32 to vector<8x128xf32>
    %16 = arith.maximumf %14, %15 : vector<8x128xf32>
    %c0_12 = arith.constant 0 : index
    %c0_13 = arith.constant 0 : index
    %17 = vector.load %arg6[%c0_12, %c0_13] : memref<128x128xbf16, #tpu.memory_space<vmem>>, vector<128x128xbf16>
    %c0_14 = arith.constant 0 : index
    %c0_15 = arith.constant 0 : index
    %18 = vector.load %arg7[%c0_14, %c0_15] : memref<1x128xf32, #tpu.memory_space<vmem>>, vector<1x128xf32>
    %19 = arith.truncf %16 : vector<8x128xf32> to vector<8x128xbf16>
    %cst_16 = arith.constant dense<0.000000e+00> : vector<8x128xf32>
    %20 = tpu.matmul %19, %17, %cst_16 {dimension_numbers = #tpu.dot_dimension_numbers<[1], [0], [0], [1], [0, 0, 1, 1], [], []>} : vector<8x128xbf16>, vector<128x128xbf16>, vector<8x128xf32> -> vector<8x128xf32>
    %21 = vector.broadcast %18 : vector<1x128xf32> to vector<8x128xf32>
    %22 = arith.addf %20, %21 : vector<8x128xf32>
    %cst_17 = arith.constant 0.000000e+00 : f32
    %23 = vector.broadcast %cst_17 : f32 to vector<8x128xf32>
    %24 = arith.maximumf %22, %23 : vector<8x128xf32>
    %c0_18 = arith.constant 0 : index
    %c0_19 = arith.constant 0 : index
    %25 = vector.load %arg8[%c0_18, %c0_19] : memref<128x128xbf16, #tpu.memory_space<vmem>>, vector<128x128xbf16>
    %c0_20 = arith.constant 0 : index
    %c0_21 = arith.constant 0 : index
    %26 = vector.load %arg9[%c0_20, %c0_21] : memref<1x128xf32, #tpu.memory_space<vmem>>, vector<1x128xf32>
    %27 = arith.truncf %24 : vector<8x128xf32> to vector<8x128xbf16>
    %cst_22 = arith.constant dense<0.000000e+00> : vector<8x128xf32>
    %28 = tpu.matmul %27, %25, %cst_22 {dimension_numbers = #tpu.dot_dimension_numbers<[1], [0], [0], [1], [0, 0, 1, 1], [], []>} : vector<8x128xbf16>, vector<128x128xbf16>, vector<8x128xf32> -> vector<8x128xf32>
    %29 = vector.broadcast %26 : vector<1x128xf32> to vector<8x128xf32>
    %30 = arith.addf %28, %29 : vector<8x128xf32>
    %c0_23 = arith.constant 0 : index
    %c0_24 = arith.constant 0 : index
    %31 = vector.load %arg10[%c0_23, %c0_24] : memref<8x128xf32, #tpu.memory_space<vmem>>, vector<8x128xf32>
    tpu.vector_store %arg10[%c0_23, %c0_24], %30 {strides = array<i32>} : memref<8x128xf32, #tpu.memory_space<vmem>>, vector<8x128xf32>,
    return
  }
  func.func @transform_0(%arg0: i32) -> (i32, i32) {
    %c0_i32 = arith.constant 0 : i32
    %c0_i32_0 = arith.constant 0 : i32
    return %arg0, %c0_i32 : i32, i32
  }
  func.func @transform_1(%arg0: i32) -> (i32, i32) {
    %c0_i32 = arith.constant 0 : i32
    %c0_i32_0 = arith.constant 0 : i32
    %c0_i32_1 = arith.constant 0 : i32
    return %c0_i32, %c0_i32_0 : i32, i32
  }
  func.func @transform_2(%arg0: i32) -> (i32, i32) {
    %c0_i32 = arith.constant 0 : i32
    %c0_i32_0 = arith.constant 0 : i32
    %c0_i32_1 = arith.constant 0 : i32
    return %c0_i32, %c0_i32_0 : i32, i32
  }
  func.func @transform_3(%arg0: i32) -> (i32, i32) {
    %c0_i32 = arith.constant 0 : i32
    %c0_i32_0 = arith.constant 0 : i32
    %c0_i32_1 = arith.constant 0 : i32
    return %c0_i32, %c0_i32_0 : i32, i32
  }
  func.func @transform_4(%arg0: i32) -> (i32, i32) {
    %c0_i32 = arith.constant 0 : i32
    %c0_i32_0 = arith.constant 0 : i32
    %c0_i32_1 = arith.constant 0 : i32
    return %c0_i32, %c0_i32_0 : i32, i32
  }
  func.func @transform_5(%arg0: i32) -> (i32, i32) {
    %c0_i32 = arith.constant 0 : i32
    %c0_i32_0 = arith.constant 0 : i32
    %c0_i32_1 = arith.constant 0 : i32
    return %c0_i32, %c0_i32_0 : i32, i32
  }
  func.func @transform_6(%arg0: i32) -> (i32, i32) {
    %c0_i32 = arith.constant 0 : i32
    %c0_i32_0 = arith.constant 0 : i32
    %c0_i32_1 = arith.constant 0 : i32
    return %c0_i32, %c0_i32_0 : i32, i32
  }
  func.func @transform_7(%arg0: i32) -> (i32, i32) {
    %c0_i32 = arith.constant 0 : i32
    %c0_i32_0 = arith.constant 0 : i32
    %c0_i32_1 = arith.constant 0 : i32
    return %c0_i32, %c0_i32_0 : i32, i32
  }
  func.func @transform_8(%arg0: i32) -> (i32, i32) {
    %c0_i32 = arith.constant 0 : i32
    %c0_i32_0 = arith.constant 0 : i32
    %c0_i32_1 = arith.constant 0 : i32
    return %c0_i32, %c0_i32_0 : i32, i32
  }
  func.func @transform_9(%arg0: i32) -> (i32, i32) {
    %c0_i32 = arith.constant 0 : i32
    %c0_i32_0 = arith.constant 0 : i32
    return %arg0, %c0_i32 : i32, i32
  }
}

</mosaic_0001>

<bundles_post_ra>
// kernel: tpu_custom_call.1
= control target key start
LH: loop header
LB: loop body
LE: loop exit
PB: predicated region body
PF: predicated region fallthrough
CT: control target
= control target key end

     0   :  { %14 = vsyncpa [#allocation3], 0  ;;  %s873_s0 = inlined_call_operand.hbm [shape: f32[8,128], index: 0, kind: input, shape index: {}]   ;;  %s874_s1 = inlined_call_operand.hbm [shape: bf16[128,128], index: 1, kind: input, shape index: {}]   ;;  %s875_s2 = inlined_call_operand.vmem [shape: f32[1,128], index: 2, kind: input, shape index: {}]   ;;  %s876_s3 = inlined_call_operand.hbm [shape: bf16[128,128], index: 3, kind: input, shape index: {}]   ;;  %s877_s4 = inlined_call_operand.vmem [shape: f32[1,128], index: 4, kind: input, shape index: {}]   ;;  %s878_s5 = inlined_call_operand.hbm [shape: bf16[128,128], index: 5, kind: input, shape index: {}]   ;;  %s879_s6 = inlined_call_operand.vmem [shape: f32[1,128], index: 6, kind: input, shape index: {}]   ;;  %s880_s7 = inlined_call_operand.hbm [shape: bf16[128,128], index: 7, kind: input, shape index: {}]   ;;  %s881_s8 = inlined_call_operand.vmem [shape: f32[1,128], index: 8, kind: input, shape index: {}]   ;;  %s882_s9 = inlined_call_operand.hbm [shape: f32[8,128], index: 9, kind: output, shape index: {}]  }
   0x1   :  { %15 = vsyncpa [#allocation6], 0 }
   0x2   :  { %16 = vsyncpa [#allocation9], 0  ;;  %s33_s11 = sshll.u32 %s874_s1, 4  ;;  %s34_s11 = int_to_ptr.hbm [resolvable:$true] %s33_s11 }
   0x3   :  { %17 = vsyncpa [#allocation4], 0  ;;  %s785_s12 = smov [#allocation5]   ;;  %s63_s16 = sshll.u32 %s878_s5, 4  ;;  %s64_s16 = int_to_ptr.hbm [resolvable:$true] %s63_s16 }
   0x4   :  { %s35_s13 = sshll.u32 %s785_s12, 4  ;;  %s786_s17 = smov 64   ;;  %s36_s13 = int_to_ptr.vmem [resolvable:$true] %s35_s13 }
   0x5   :  { %s787_s18 = smov 4   ;;  %s788_s19 = smov [#allocation8]  }
   0x6   :  { %41 = dma.hbm_to_vmem [thread:$0]  %s34_s11, 1024, %s36_s13, [#allocation6], %s786_s17, %s786_s17, %s787_s18  }
   0x7   :  { %s65_s20 = sshll.u32 %s788_s19, 4  ;;  %s23_s23 = sshll.u32 %s873_s0, 4  ;;  %s66_s20 = int_to_ptr.vmem [resolvable:$true] %s65_s20  ;;  %s24_s23 = int_to_ptr.hbm [resolvable:$true] %s23_s23 }
   0x8   :  { %71 = dma.hbm_to_vmem [thread:$0]  %s64_s16, 1024, %s66_s20, [#allocation9], %s786_s17, %s786_s17, %s787_s18  }
   0x9   :  { %s48_s25 = sshll.u32 %s876_s3, 4  ;;  %s789_s26 = smov [#allocation2]   ;;  %s49_s25 = int_to_ptr.hbm [resolvable:$true] %s48_s25 }
   0xa   :  { %s25_s27 = sshll.u32 %s789_s26, 4  ;;  %s790_s5 = smov [#allocation7]   ;;  %s26_s27 = int_to_ptr.vmem [resolvable:$true] %s25_s27 }
   0xb   :  { %28 = dma.hbm_to_vmem [thread:$0]  %s24_s23, 128, %s26_s27, [#allocation3]  }
   0xc   :  { %s50_s28 = sshll.u32 %s790_s5, 4  ;;  %s78_s10 = sshll.u32 %s880_s7, 4  ;;  %s51_s28 = int_to_ptr.vmem [resolvable:$true] %s50_s28  ;;  %s79_s10 = int_to_ptr.hbm [resolvable:$true] %s78_s10 }
   0xd   :  { %56 = dma.hbm_to_vmem [thread:$0]  %s49_s25, 1024, %s51_s28, [#allocation6], %s786_s17, %s786_s17, %s787_s18  }
   0xe   :  { %s791_s0 = smov [#allocation10]  }
   0xf   :  { %s80_s11 = sshll.u32 %s791_s0, 4  ;;  %s81_s11 = int_to_ptr.vmem [resolvable:$true] %s80_s11 }
  0x10   :  { %86 = dma.hbm_to_vmem [thread:$0]  %s79_s10, 1024, %s81_s11, [#allocation9], %s786_s17, %s786_s17, %s787_s18  }
  0x11   :  { %777 = dma.done.wait [#allocation3], 128  }
  0x12   :  { %778 = vsyncadd [#allocation3], 4294967168 }
  0x13   :  { %779 = dma.done.wait [#allocation6], 2048  }
  0x14   :  { %780 = vsyncadd [#allocation6], 4294965248 }
  0x15   :  { %781 = dma.done.wait [#allocation9], 2048  }
  0x16   :  { %782 = vsyncadd [#allocation9], 4294965248  ;;  %v596_v0 = vld [vmem:[#allocation5 + $0x38] sm:$0xff]  ;;  %v595_v1 = vld [vmem:[#allocation5 + $0x30] sm:$0xff]  ;;  %s792_s16 = smov [#allocation11]   ;;  %s449_s20 = sshll.u32 %s882_s9, 4  ;;  %s450_s20 = int_to_ptr.hbm [resolvable:$true] %s449_s20 }
  0x17   :  { %179 = vmatpush.bf16.msra.mxu0 %v596_v0  ;;  %v604_v2 = vld [vmem:[#allocation7 + $0x38] sm:$0xff]  ;;  %v603_v3 = vld [vmem:[#allocation7 + $0x30] sm:$0xff]  ;;  %v594_v4 = vld [vmem:[#allocation5 + $0x28] sm:$0xff]  ;;  %s447_s17 = sshll.u32 %s792_s16, 4  ;;  %s448_s17 = int_to_ptr.vmem [resolvable:$true] %s447_s17 }
  0x18   :  { %262 = vmatpush.bf16.msra.mxu1 %v604_v2  ;;  %v602_v5 = vld [vmem:[#allocation7 + $0x28] sm:$0xff]  ;;  %v593_v6 = vld [vmem:[#allocation5 + $0x20] sm:$0xff]  ;;  %v592_v8 = vld [vmem:[#allocation5 + $0x18] sm:$0xff] }
  0x19   :  { %v601_v7 = vld [vmem:[#allocation7 + $0x20] sm:$0xff]  ;;  %v600_v9 = vld [vmem:[#allocation7 + $0x18] sm:$0xff]  ;;  %v591_v10 = vld [vmem:[#allocation5 + $0x10] sm:$0xff] }
  0x1a   :  { %v599_v11 = vld [vmem:[#allocation7 + $0x10] sm:$0xff]  ;;  %v590_v12 = vld [vmem:[#allocation5 + $0x8] sm:$0xff]  ;;  %v589_v13 = vld [vmem:[#allocation5] sm:$0xff] }
  0x1b   :  { %180 = vmatpush.bf16.msra.mxu0 %v595_v1  ;;  %v109_v14 = vld [vmem:[#allocation2] sm:$0xff]  ;;  %v598_v16 = vld [vmem:[#allocation7 + $0x8] sm:$0xff]  ;;  %v597_v17 = vld [vmem:[#allocation7] sm:$0xff] }
  0x1c   :  { %263 = vmatpush.bf16.msra.mxu1 %v603_v3  ;;  %v127_v15 = vpack.c.bf16 %v109_v14, %v109_v14  ;;  %v612_v18 = vld [vmem:[#allocation8 + $0x38] sm:$0xff]  ;;  %v611_v19 = vld [vmem:[#allocation8 + $0x30] sm:$0xff]  ;;  %v610_v20 = vld [vmem:[#allocation8 + $0x28] sm:$0xff] }
  0x1d   :  { %345 = vmatpush.bf16.msra.mxu2 %v612_v18  ;;  %v609_v21 = vld [vmem:[#allocation8 + $0x20] sm:$0xff]  ;;  %v608_v22 = vld [vmem:[#allocation8 + $0x18] sm:$0xff]  ;;  %v607_v23 = vld [vmem:[#allocation8 + $0x10] sm:$0xff] }
  0x1e   :  { %v629_v24 = vld [vmem:[%s875_s2] ss:$0 sm:$0xff]  ;;  %v606_v30 = vld [vmem:[#allocation8 + $0x8] sm:$0xff]  ;;  %v605_v31 = vld [vmem:[#allocation8] sm:$0xff] }
  0x1f   :  { %181 = vmatpush.bf16.msra.mxu0 %v594_v4  ;;  %v620_v32 = vld [vmem:[#allocation10 + $0x38] sm:$0xff]  ;;  %v619_v33 = vld [vmem:[#allocation10 + $0x30] sm:$0xff]  ;;  %v618_v34 = vld [vmem:[#allocation10 + $0x28] sm:$0xff] }
  0x20   :  { %264 = vmatpush.bf16.msra.mxu1 %v602_v5  ;;  %428 = vmatpush.bf16.msra.mxu3 %v620_v32  ;;  %v617_v35 = vld [vmem:[#allocation10 + $0x20] sm:$0xff]  ;;  %v616_v36 = vld [vmem:[#allocation10 + $0x18] sm:$0xff]  ;;  %v615_v37 = vld [vmem:[#allocation10 + $0x10] sm:$0xff] }
  0x21   :  { %346 = vmatpush.bf16.msra.mxu2 %v611_v19  ;;  %v630_v38 = vld [vmem:[%s877_s4] ss:$0 sm:$0xff]  ;;  %v614_v44 = vld [vmem:[#allocation10 + $0x8] sm:$0xff]  ;;  %v613_v45 = vld [vmem:[#allocation10] sm:$0xff] }
  0x22   :  { %v631_v46 = vld [vmem:[%s879_s6] ss:$0 sm:$0xff] }
  0x23   :  { %182 = vmatpush.bf16.msra.mxu0 %v593_v6  ;;  %v632_v52 = vld [vmem:[%s881_s8] ss:$0 sm:$0xff] }
  0x24   :  { %265 = vmatpush.bf16.msra.mxu1 %v601_v7  ;;  %429 = vmatpush.bf16.msra.mxu3 %v619_v33 }
  0x25   :  { %347 = vmatpush.bf16.msra.mxu2 %v610_v20 }
  0x27   :  { %183 = vmatpush.bf16.msra.mxu0 %v592_v8 }
  0x28   :  { %266 = vmatpush.bf16.msra.mxu1 %v600_v9  ;;  %430 = vmatpush.bf16.msra.mxu3 %v618_v34 }
  0x29   :  { %348 = vmatpush.bf16.msra.mxu2 %v609_v21 }
  0x2b   :  { %184 = vmatpush.bf16.msra.mxu0 %v591_v10 }
  0x2c   :  { %267 = vmatpush.bf16.msra.mxu1 %v599_v11  ;;  %431 = vmatpush.bf16.msra.mxu3 %v617_v35 }
  0x2d   :  { %349 = vmatpush.bf16.msra.mxu2 %v608_v22 }
  0x2f   :  { %185 = vmatpush.bf16.msra.mxu0 %v590_v12 }
  0x30   :  { %268 = vmatpush.bf16.msra.mxu1 %v598_v16  ;;  %432 = vmatpush.bf16.msra.mxu3 %v616_v36 }
  0x31   :  { %350 = vmatpush.bf16.msra.mxu2 %v607_v23 }
  0x33   :  { %186 = vmatpush.bf16.msra.mxu0 %v589_v13 }
  0x34   :  { %269 = vmatpush.bf16.msra.mxu1 %v597_v17  ;;  %433 = vmatpush.bf16.msra.mxu3 %v615_v37 }
  0x35   :  { %351 = vmatpush.bf16.msra.mxu2 %v606_v30 }
  0x36   :  { %187 = vmatmul.bf16.vlgmr.msra.gmra.mxu0 %v127_v15 }
  0x38   :  { %434 = vmatpush.bf16.msra.mxu3 %v614_v44 }
  0x39   :  { %352 = vmatpush.bf16.msra.mxu2 %v605_v31 }
  0x3c   :  { %435 = vmatpush.bf16.msra.mxu3 %v613_v45 }
  0xb3   :  { %v188_v25 = vpop.f32.mrf.mxu0 }
  0xb4   :  { %v189_v26 = vadd.f32 %v629_v24, %v188_v25 }
  0xb6   :  { %v192_v27 = vmax.f32 %v189_v26, 0.0 }
  0xb8   :  { %v210_v28 = vpack.c.bf16 %v192_v27, %v192_v27 }
  0xba   :  { %270 = vmatmul.bf16.vlgmr.msra.gmra.mxu1 %v210_v28 }
  0xbb   :  { %v190_v29 = vpop.f32.mrf.mxu0 }
 0x137   :  { %v271_v39 = vpop.f32.mrf.mxu1 }
 0x138   :  { %v272_v40 = vadd.f32 %v630_v38, %v271_v39 }
 0x13a   :  { %v275_v41 = vmax.f32 %v272_v40, 0.0 }
 0x13c   :  { %v293_v42 = vpack.c.bf16 %v275_v41, %v275_v41 }
 0x13e   :  { %353 = vmatmul.bf16.vlgmr.msra.gmra.mxu2 %v293_v42 }
 0x13f   :  { %v273_v43 = vpop.f32.mrf.mxu1 }
 0x1c1   :  { %v354_v47 = vpop.f32.mrf.mxu2 }
 0x1c2   :  { %v355_v48 = vadd.f32 %v631_v46, %v354_v47 }
 0x1c4   :  { %v358_v49 = vmax.f32 %v355_v48, 0.0 }
 0x1c6   :  { %v376_v50 = vpack.c.bf16 %v358_v49, %v358_v49 }
 0x1c8   :  { %436 = vmatmul.bf16.vlgmr.msra.gmra.mxu3 %v376_v50 }
 0x1c9   :  { %v356_v51 = vpop.f32.mrf.mxu2 }
 0x24b   :  { %v437_v53 = vpop.f32.mrf.mxu3 }
 0x24c   :  { %v438_v54 = vadd.f32 %v632_v52, %v437_v53 }
 0x24e   :  { %441 = vst [vmem:[#allocation11] sm:$0xff] %v438_v54 }
 0x24f   :  { %452 = dma.vmem_to_hbm [thread:$0]  %s448_s17, 128, %s450_s20, [#allocation4]  }
 0x253   :  { %v439_v55 = vpop.f32.mrf.mxu3 }
 0x254   :  { %783 = dma.done.wait [#allocation4], 128  }
 0x255   :  { %784 = vsyncadd [#allocation4], 4294967168 }
 0x256   :  { %457 = vsyncpa [#allocation3], 1 }
 0x257   :  { %458 = vsyncpa [#allocation6], 1 }
 0x258   :  { %459 = vsyncpa [#allocation9], 1 }
 0x259   :  { %460 = vsyncpa [#allocation4], 1 }

</bundles_post_ra>
